<compile_context>
chip_gen: v7x
topology: tpu7x:2x2x1
jax: 0.10.0
libtpu: 0.0.40
codegen_flags: <defaults>
</compile_context>

<pallas_src>
import jax
import jax.numpy as jnp
from jax import lax
from jax.experimental import pallas as pl
from jax.experimental.pallas import tpu as pltpu

TEXT_EMBEDDING_SIZE = 32          # text_embedding_size of the (emulated) transformer
REGION_TYPE_EMBEDDING_SIZE = 16   # REGION_TYPE_EMBEDDING_SIZE
NUM_LABELS = 4                    # len(Label)
NUM_REGION_TYPES = 6


def _linear_softmax_kernel(x_ref, w_ref, b_ref, o_ref):
    # x_ref: (TM, D)  row tile of region embeddings (bf16 or f32)
    # w_ref: (L, D)   resident nn.Linear weight (PyTorch layout, trans_b style)
    # b_ref: (L, 1)   resident bias, f32
    # o_ref: (L, TM)  lane-dense transposed probabilities
    #
    # logits^T = W @ x^T -> (L, TM): the big batch axis stays on the 128-wide
    # lane axis for the matmul result, the softmax and the HBM writeback
    # (no masked 4-lane partial stores).
    logits = lax.dot_general(
        w_ref[...], x_ref[...],
        dimension_numbers=(((1,), (1,)), ((), ())),   # contract over D
        preferred_element_type=jnp.float32,
    )
    logits = logits + b_ref[...]                      # (L, TM) + (L, 1) lane broadcast
    # Numerically-stable softmax over the label (sublane) axis == PyTorch
    # Softmax(dim=1) on the untransposed (N, L) logits.  All f32 (v5e has no
    # bf16 VPU/EUP).  Each output column depends only on its own x row, so
    # clipped/garbage rows of a partial last block never affect real columns.
    m = jnp.max(logits, axis=0, keepdims=True)        # (1, TM)
    e = jnp.exp(logits - m)
    denom = jnp.sum(e, axis=0, keepdims=True)         # (1, TM)
    o_ref[...] = (e / denom).astype(o_ref.dtype)      # exact divide (see header)


def _default_row_tile():
    """Per-generation row tile so per-grid-step HBM traffic is MiB-scale."""
    try:
        kind = jax.devices()[0].device_kind.lower()
    except Exception:
        kind = ""
    if "v5 lite" in kind or "v5e" in kind or "v5litepod" in kind:
        return 16384     # ~1.5 MiB/step of x @ ~0.82 TB/s HBM
    if "v6" in kind or "trillium" in kind:
        return 32768     # ~3 MiB/step @ ~1.4 TB/s HBM; 128 MiB VMEM -> no pressure
    if "v7" in kind:
        return 32768     # ~3-6 MiB/step; >=2 even grid steps feed both TCs
    return 16384


def region_classifier_forward(region_embeddings, weight, bias, *,
                              tm=None, out_dtype=jnp.float32,
                              transpose_output=True,
                              min_pallas_rows=4096, force_pallas=False):
    """Linear(D->L) + Softmax(dim=1) head of RegionClassifier.

    Args:
      region_embeddings: (N, D).  Pass bf16 when the producer can emit it for
        free (halves the dominant HBM read); f32 also works -- no standalone
        cast pass is ever added here.
      weight: (L, D) nn.Linear weight (PyTorch layout).
      bias:   (L,)   nn.Linear bias.
      tm: rows per grid step (default: per-generation, see _default_row_tile).
      out_dtype: dtype of the returned probabilities (bf16 halves writeback).
      transpose_output: True -> (N, L) like the PyTorch module; False -> the
        kernel-native lane-dense (L, N) layout (saves an extra HBM pass for
        large N; argmax/top-k over labels is axis 0 in that layout).
      min_pallas_rows / force_pallas: below the threshold a fused XLA
        linear+softmax is used unless force_pallas=True.
    """
    n, d = region_embeddings.shape
    l = weight.shape[0]

    # Small-N dispatch: kernel launch + block clipping overhead dominates.
    if n < min_pallas_rows and not force_pallas:
        logits = (region_embeddings.astype(jnp.float32)
                  @ weight.astype(jnp.float32).T + bias.astype(jnp.float32))
        probs = jax.nn.softmax(logits, axis=-1).astype(out_dtype)   # (N, L)
        return probs if transpose_output else probs.T

    if tm is None:
        tm = _default_row_tile()

    # Grid sizing: once the batch is big enough, use an even number (>=2) of
    # balanced slabs so ("parallel",) splits across both v7x TensorCores.  The
    # row tile is a multiple of 128 (it is the lane dim of the transposed out).
    steps = max(1, pl.cdiv(n, int(tm)))
    if n >= 2 * 128:
        steps = max(2, steps)
        steps += steps % 2
    tm_eff = pl.cdiv(pl.cdiv(n, steps), 128) * 128

    # No jnp.pad: Pallas clips the partial last block.  Out-of-range x rows are
    # unspecified, but softmax is strictly per output column, so they can only
    # pollute output columns >= n, which are never written to the (l, n) array.
    x = region_embeddings
    w = weight.astype(x.dtype)                     # tiny (L, D), resident in VMEM
    b = bias.reshape(l, 1).astype(jnp.float32)

    probs_t = pl.pallas_call(
        _linear_softmax_kernel,
        out_shape=jax.ShapeDtypeStruct((l, n), out_dtype),
        grid_spec=pltpu.PrefetchScalarGridSpec(
            num_scalar_prefetch=0,
            grid=(steps,),
            in_specs=[
                pl.BlockSpec((tm_eff, d), lambda i: (i, 0)),   # row tile of x
                pl.BlockSpec((l, d), lambda i: (0, 0)),        # resident weight
                pl.BlockSpec((l, 1), lambda i: (0, 0)),        # resident bias
            ],
            out_specs=pl.BlockSpec((l, tm_eff), lambda i: (0, i)),  # lane-dense slab
        ),
        compiler_params=pltpu.CompilerParams(
            dimension_semantics=("parallel",),      # disjoint slabs -> megacore
            vmem_limit_bytes=48 * 1024 * 1024,      # headroom for big tiles on v7x (64 MiB)
        ),
    )(x, w, b)

    # (L, N) -> (N, L) only if the caller wants the PyTorch layout.
    return probs_t.T if transpose_output else probs_t


def make_region_embeddings(text_emb, region_type_ids, region_type_table,
                           dtype=jnp.bfloat16):
    # TODO(synk): the pretrained sentence-transformer text encoder is not
    # implemented in Pallas; text_emb stands in for its output.  The concat
    # matches RegionEmbeddingSentenceTransformer's [text_emb ; region_type_emb].
    rt_emb = region_type_table[region_type_ids]                 # (N, E_rt)
    emb = jnp.concatenate([text_emb, rt_emb], axis=-1)          # (N, D)
    # The bf16 cast fuses into this producer (no standalone HBM pass) and
    # halves the kernel's dominant read traffic.
    return emb.astype(dtype)


if __name__ == "__main__":
    key = jax.random.PRNGKey(0)
    k_text, k_ids, k_table, k_w, k_b, k_text2, k_ids2 = jax.random.split(key, 7)

    D = TEXT_EMBEDDING_SIZE + REGION_TYPE_EMBEDDING_SIZE     # 48
    L = NUM_LABELS                                           # 4

    # nn.Linear(D, L) params (Kaiming-uniform-ish bound 1/sqrt(D)).
    bound = 1.0 / (D ** 0.5)
    weight = jax.random.uniform(k_w, (L, D), jnp.float32, -bound, bound)
    bias = jax.random.uniform(k_b, (L,), jnp.float32, -bound, bound)

    region_type_table = jax.random.normal(
        k_table, (NUM_REGION_TYPES, REGION_TYPE_EMBEDDING_SIZE), dtype=jnp.float32)

    def run_case(k_t, k_i, n):
        text_emb = jax.random.normal(k_t, (n, TEXT_EMBEDDING_SIZE), dtype=jnp.float32)
        ids = jax.random.randint(k_i, (n,), 0, NUM_REGION_TYPES)
        emb = make_region_embeddings(text_emb, ids, region_type_table)   # bf16 (N, D)
        probs = region_classifier_forward(emb, weight, bias, force_pallas=True)
        probs = jax.block_until_ready(probs)

        # Reference on the same (bf16-representable) inputs the kernel reads:
        # bf16 x bf16 products are exact in f32, so this check is precision-robust.
        emb_f32 = emb.astype(jnp.float32)
        w_f32 = weight.astype(emb.dtype).astype(jnp.float32)
        ref = jax.nn.softmax(emb_f32 @ w_f32.T + bias, axis=1)

        assert probs.shape == (n, L)
        assert jnp.allclose(probs, ref, atol=1e-4, rtol=1e-4), (
            "max |diff| = %g" % float(jnp.max(jnp.abs(probs - ref))))
        assert jnp.allclose(jnp.sum(probs, axis=1), 1.0, atol=1e-4)

    # Small batch: single grid step, block clipping (N=16 < 128-row tile).
    run_case(k_text, k_ids, 16)
    # Multi-step grid with a partial last block (exercises the no-pad path).
    run_case(k_text2, k_ids2, 1000)

    # The small-N dispatcher (fused XLA linear+softmax) path also runs.
    emb_small = make_region_embeddings(
        jax.random.normal(k_text, (8, TEXT_EMBEDDING_SIZE), jnp.float32),
        jax.random.randint(k_ids, (8,), 0, NUM_REGION_TYPES),
        region_type_table)
    p_small = jax.block_until_ready(
        region_classifier_forward(emb_small, weight, bias))
    assert p_small.shape == (8, L)

    print("KERNEL_OK")
</pallas_src>

<mosaic_0001>
module attributes {stable_mosaic.version = 11 : i64} {
  func.func @_linear_softmax_kernel(%arg0: i32, %arg1: memref<128x48xbf16, #tpu.memory_space<vmem>>, %arg2: memref<4x48xbf16, #tpu.memory_space<vmem>>, %arg3: memref<4x1xf32, #tpu.memory_space<vmem>>, %arg4: memref<4x128xf32, #tpu.memory_space<vmem>>) attributes {dimension_semantics = [#tpu.dimension_semantics<parallel>], iteration_bounds = array<i64: 1>, scalar_prefetch = 0 : i64, scratch_operands = 0 : i64, tpu.core_type = #tpu.core_type<tc>, window_params = [{transform_indices = @transform_0, window_bounds = array<i64: 128, 48>}, {pipeline_mode = #tpu.pipeline_mode<synchronous>, transform_indices = @transform_1, window_bounds = array<i64: 4, 48>}, {pipeline_mode = #tpu.pipeline_mode<synchronous>, transform_indices = @transform_2, window_bounds = array<i64: 4, 1>}, {transform_indices = @transform_3, window_bounds = array<i64: 4, 128>}]} {
    %c0 = arith.constant 0 : index
    %c0_0 = arith.constant 0 : index
    %0 = vector.load %arg2[%c0, %c0_0] : memref<4x48xbf16, #tpu.memory_space<vmem>>, vector<4x48xbf16>
    %c0_1 = arith.constant 0 : index
    %c0_2 = arith.constant 0 : index
    %1 = vector.load %arg1[%c0_1, %c0_2] : memref<128x48xbf16, #tpu.memory_space<vmem>>, vector<128x48xbf16>
    %cst = arith.constant dense<0.000000e+00> : vector<4x128xf32>
    %2 = tpu.matmul %0, %1, %cst {dimension_numbers = #tpu.dot_dimension_numbers<[1], [1], [0], [0], [0, 0, 1, 0], [], []>} : vector<4x48xbf16>, vector<128x48xbf16>, vector<4x128xf32> -> vector<4x128xf32>
    %c0_3 = arith.constant 0 : index
    %c0_4 = arith.constant 0 : index
    %3 = vector.load %arg3[%c0_3, %c0_4] : memref<4x1xf32, #tpu.memory_space<vmem>>, vector<4x1xf32>
    %4 = vector.broadcast %3 : vector<4x1xf32> to vector<4x128xf32>
    %5 = arith.addf %2, %4 : vector<4x128xf32>
    %cst_5 = arith.constant dense<0xFF800000> : vector<128xf32>
    %6 = vector.multi_reduction <maximumf>, %5, %cst_5 [0] : vector<4x128xf32> to vector<128xf32>
    %7 = vector.shape_cast %6 : vector<128xf32> to vector<1x128xf32>
    %8 = vector.broadcast %7 : vector<1x128xf32> to vector<4x128xf32>
    %9 = arith.subf %5, %8 : vector<4x128xf32>
    %10 = math.exp %9 : vector<4x128xf32>
    %cst_6 = arith.constant dense<0.000000e+00> : vector<128xf32>
    %11 = vector.multi_reduction <add>, %10, %cst_6 [0] : vector<4x128xf32> to vector<128xf32>
    %12 = vector.shape_cast %11 : vector<128xf32> to vector<1x128xf32>
    %13 = vector.broadcast %12 : vector<1x128xf32> to vector<4x128xf32>
    %14 = arith.divf %10, %13 : vector<4x128xf32>
    %c0_7 = arith.constant 0 : index
    %c0_8 = arith.constant 0 : index
    %15 = vector.load %arg4[%c0_7, %c0_8] : memref<4x128xf32, #tpu.memory_space<vmem>>, vector<4x128xf32>
    tpu.vector_store %arg4[%c0_7, %c0_8], %14 {strides = array<i32>} : memref<4x128xf32, #tpu.memory_space<vmem>>, vector<4x128xf32>,
    return
  }
  func.func @transform_0(%arg0: i32) -> (i32, i32) {
    %c0_i32 = arith.constant 0 : i32
    %c0_i32_0 = arith.constant 0 : i32
    return %arg0, %c0_i32 : i32, i32
  }
  func.func @transform_1(%arg0: i32) -> (i32, i32) {
    %c0_i32 = arith.constant 0 : i32
    %c0_i32_0 = arith.constant 0 : i32
    %c0_i32_1 = arith.constant 0 : i32
    return %c0_i32, %c0_i32_0 : i32, i32
  }
  func.func @transform_2(%arg0: i32) -> (i32, i32) {
    %c0_i32 = arith.constant 0 : i32
    %c0_i32_0 = arith.constant 0 : i32
    %c0_i32_1 = arith.constant 0 : i32
    return %c0_i32, %c0_i32_0 : i32, i32
  }
  func.func @transform_3(%arg0: i32) -> (i32, i32) {
    %c0_i32 = arith.constant 0 : i32
    %c0_i32_0 = arith.constant 0 : i32
    return %c0_i32, %arg0 : i32, i32
  }
}

</mosaic_0001>

<bundles_post_ra>
// kernel: tpu_custom_call.1
= control target key start
LH: loop header
LB: loop body
LE: loop exit
PB: predicated region body
PF: predicated region fallthrough
CT: control target
= control target key end

     0   :  { %8 = vsyncpa [#allocation3], 0  ;;  %s371_s0 = inlined_call_operand.hbm [shape: bf16[16,48], index: 0, kind: input, shape index: {}]   ;;  %s372_s1 = inlined_call_operand.vmem [shape: bf16[4,48], index: 1, kind: input, shape index: {}]   ;;  %s373_s2 = inlined_call_operand.vmem [shape: f32[4,1], index: 2, kind: input, shape index: {}]   ;;  %s374_s3 = inlined_call_operand.hbm [shape: f32[4,16], index: 3, kind: output, shape index: {}]  }
   0x1   :  { %9 = vsyncpa [#allocation4], 0 }
   0x2   :  { %14 = vsyncadd [#allocation3], 896  ;;  %s303_s12 = smov [#allocation2]   ;;  %s255_s16 = scalar_lea.hbm %s371_s0, 128 }
   0x3   :  { %s15_s13 = sshll.u32 %s303_s12, 4  ;;  %p256_p0 = scmp.ne.s32.totalorder %s371_s0, %s255_s16  ;;  %s16_s13 = int_to_ptr.vmem [resolvable:$true] %s15_s13 }
   0x4   :  { %p259_p1 = scmp.lt.u32.totalorder %s255_s16, %s371_s0 }
   0x6   :  { %p261_p2 = pnand %p259_p1, %p256_p0 }
   0x8   :  { %264 = shalt.err (!%p261_p2)
}
   0x9   :  { %s265_s21 = scalar_lea.vmem %s16_s13, 128  ;;  %s269_s22 = scalar_lea.vmem %s16_s13, 1024 }
   0xa   :  { %p266_p3 = scmp.ne.s32.totalorder %s16_s13, %s265_s21  ;;  %p270_p4 = scmp.lt.s32.totalorder %s16_s13, %s16_s13 }
   0xb   :  { %p271_p5 = scmp.lt.s32.totalorder %s269_s22, %s265_s21 }
   0xd   :  { %p272_p6 = por %p271_p5, %p270_p4 }
   0xf   :  { %p273_p7 = pnand %p272_p6, %p266_p3 }
  0x11   :  { %276 = shalt.err (!%p273_p7)
}
  0x12   :  { %s304_s23 = smov 64   ;;  %s305_s24 = smov 4  }
  0x13   :  { %21 = dma.hbm_to_vmem [thread:$0]  %s371_s0, 128, %s16_s13, [#allocation3], %s304_s23, %s304_s23, %s305_s24  }
  0x14   :  { %299 = dma.done.wait [#allocation3], 1024  }
  0x15   :  { %300 = vsyncadd [#allocation3], 4294966272  ;;  %v306_v0 = vmov 0.0   ;;  %vm307_vm0 = vmmov 0   ;;  %v308_v1 = vmov 0   ;;  %vm93_vm1 = vcmask 392192  }
  0x16   :  { %215 = vmatprep.subr.bf16.mxu0 %v306_v0  ;;  %231 = vmatprep.mubr.msk.bf16.mxu0 %vm307_vm0, %v306_v0  ;;  %v243_v2 = vld [vmem:[#allocation2] sm:$0xff]   ;;  %v244_v4 = vld [vmem:[#allocation2 + $0x8] sm:$0xff]   ;;  %v245_v7 = vld [vmem:[#allocation2 + $0x10] sm:$0xff]   ;;  %vm161_vm2 = vcmask 1043456  }
  0x17   :  { %242 = vset.pattern.permute.xlu0 %v308_v1  ;;  %v98_v3 = vsel %vm93_vm1, %v243_v2, 0  ;;  %v101_v5 = vsel %vm93_vm1, %v244_v4, 0  ;;  %v47_v6 = vld [vmem:[%s373_s2] sm:$0xf]  ;;  %v104_v8 = vsel %vm93_vm1, %v245_v7, 0  ;;  %v246_v9 = vld [vmem:[#allocation2 + $0x18] sm:$0xff]  }
  0x18   :  { %216 = vmatpush3.bf16.xpose.msra.mxu0 %v98_v3  ;;  %50 = vperm.xlu0 %242, %v47_v6   ;;  %v107_v10 = vsel %vm93_vm1, %v246_v9, 0  ;;  %v247_v11 = vld [vmem:[#allocation2 + $0x20] sm:$0xff]   ;;  %v248_v13 = vld [vmem:[#allocation2 + $0x28] sm:$0xff]   ;;  %v249_v15 = vld [vmem:[#allocation2 + $0x30] sm:$0xff]  }
  0x19   :  { %217 = vmatprep.subr.bf16.mxu0 %v306_v0  ;;  %v110_v12 = vsel %vm93_vm1, %v247_v11, 0  ;;  %v113_v14 = vsel %vm93_vm1, %v248_v13, 0  ;;  %v116_v16 = vsel %vm93_vm1, %v249_v15, 0  ;;  %v250_v17 = vld [vmem:[#allocation2 + $0x38] sm:$0xff]   ;;  %v30_v19 = vld [vmem:[%s372_s1] sm:$0x3] }
  0x1a   :  { %v119_v18 = vsel %vm93_vm1, %v250_v17, 0  ;;  %s309_s1 = smov [#allocation5]  }
  0x1b   :  { %s188_s29 = sshll.u32 %s309_s1, 4  ;;  %s189_s29 = int_to_ptr.vmem [resolvable:$true] %s188_s29 }
  0x1c   :  { %s277_s30 = scalar_lea.vmem %s189_s29, 64  ;;  %p282_p9 = scmp.lt.s32.totalorder %s189_s29, %s189_s29 }
  0x1d   :  { %p278_p8 = scmp.ne.s32.totalorder %s189_s29, %s277_s30  ;;  %p283_p10 = scmp.lt.s32.totalorder %s277_s30, %s277_s30 }
  0x1f   :  { %p284_p11 = por %p283_p10, %p282_p9 }
  0x20   :  { %218 = vmatpush3.bf16.xpose.msra.mxu0 %v101_v5 }
  0x21   :  { %219 = vmatprep.subr.bf16.mxu0 %v306_v0  ;;  %p285_p12 = pnand %p284_p11, %p278_p8 }
  0x28   :  { %220 = vmatpush3.bf16.xpose.msra.mxu0 %v104_v8 }
  0x29   :  { %221 = vmatprep.subr.bf16.mxu0 %v306_v0 }
  0x30   :  { %222 = vmatpush3.bf16.xpose.msra.mxu0 %v107_v10 }
  0x31   :  { %223 = vmatprep.subr.bf16.mxu0 %v306_v0 }
  0x38   :  { %224 = vmatpush3.bf16.xpose.msra.mxu0 %v110_v12 }
  0x39   :  { %225 = vmatprep.subr.bf16.mxu0 %v306_v0 }
  0x40   :  { %226 = vmatpush3.bf16.xpose.msra.mxu0 %v113_v14 }
  0x41   :  { %227 = vmatprep.subr.bf16.mxu0 %v306_v0 }
  0x48   :  { %228 = vmatpush3.bf16.xpose.msra.mxu0 %v116_v16 }
  0x49   :  { %229 = vmatprep.subr.bf16.mxu0 %v306_v0 }
  0x50   :  { %230 = vmatpush3.bf16.xpose.msra.mxu0 %v119_v18 }
  0x57   :  { %232 = vmatmul.mubr.msk.bf16.vlgmr.msra.gmra.mrb[0].mxu0 %vm93_vm1, %v30_v19 }
  0x97   :  { %v51_v20 = vpop.permute.xlu0 %50 }
 0x12a   :  { %v155_v21 = vpop.f32.mrb[0].mxu0 }
 0x12b   :  { %v156_v22 = vadd.f32 %v155_v21, %v51_v20  ;;  %v233_v23 = vpop.f32.mrb[1].mxu0 }
 0x12c   :  { %v158_v24 = vpop.f32.mrb[2].mxu0 }
 0x12d   :  { %v162_v25 = vsel %vm161_vm2, %v156_v22, -inf  ;;  %v234_v26 = vpop.f32.mrb[3].mxu0 }
 0x12e   :  { %v163_v27 = vrot.slane %v162_v25, 4 }
 0x130   :  { %v164_v28 = vmax.f32 %v162_v25, %v163_v27 }
 0x132   :  { %v165_v29 = vrot.slane %v164_v28, 2 }
 0x134   :  { %v166_v30 = vmax.f32 %v164_v28, %v165_v29 }
 0x136   :  { %v167_v31 = vrot.slane %v166_v30, 1 }
 0x138   :  { %v168_v32 = vmax.f32 %v166_v30, %v167_v31 }
 0x13a   :  { %v169_v33 = vsub.f32 %v156_v22, %v168_v32 }
 0x13c   :  { %v170_v34 = vmul.f32 1.442695, %v169_v33 }
 0x13e   :  { %251 = vpow2.f32 %v170_v34 }
 0x148   :  { %v252_v35 = vpop.eup %251 }
 0x149   :  { %v172_v36 = vsel %vm161_vm2, %v252_v35, 0.0 }
 0x14a   :  { %v173_v37 = vrot.slane %v172_v36, 4 }
 0x14c   :  { %v174_v38 = vadd.f32 %v173_v37, %v172_v36 }
 0x14e   :  { %v175_v39 = vrot.slane %v174_v38, 2 }
 0x150   :  { %v176_v40 = vadd.f32 %v175_v39, %v174_v38 }
 0x152   :  { %v177_v41 = vrot.slane %v176_v40, 1 }
 0x154   :  { %v178_v42 = vadd.f32 %v177_v41, %v176_v40 }
 0x156   :  { %253 = vrcp.f32 %v178_v42 }
 0x160   :  { %v254_v43 = vpop.eup %253 }
 0x161   :  { %v180_v44 = vmul.f32 %v254_v43, %v252_v35 }
 0x163   :  { %181 = vst [vmem:[#allocation5] sm:$0xf] %v180_v44 }
 0x164   :  { %288 = shalt.err (!%p285_p12)
}
 0x165   :  { %s289_s6 = scalar_lea.hbm %s374_s3, 64 }
 0x166   :  { %p290_p13 = scmp.ne.s32.totalorder %s374_s3, %s289_s6  ;;  %p293_p0 = scmp.lt.u32.totalorder %s289_s6, %s374_s3 }
 0x168   :  { %p295_p1 = pnand %p293_p0, %p290_p13 }
 0x16a   :  { %298 = shalt.err (!%p295_p1)
}
 0x16b   :  { %191 = dma.vmem_to_hbm [thread:$0]  %s189_s29, 64, %s374_s3, [#allocation4]  }
 0x16c   :  { %301 = dma.done.wait [#allocation4], 64  }
 0x16d   :  { %302 = vsyncadd [#allocation4], 4294967232 }
 0x16e   :  { %195 = vsyncpa [#allocation3], 1 }
 0x16f   :  { %196 = vsyncpa [#allocation4], 1 }

</bundles_post_ra>
